<compile_context>
chip_gen: v7x
topology: tpu7x:2x2x1
jax: 0.10.0
libtpu: 0.0.40
codegen_flags: <defaults>
</compile_context>

<pallas_src>
import functools
import numpy as np
import jax
import jax.numpy as jnp
from jax.experimental import pallas as pl
from jax.experimental.pallas import tpu as pltpu

K_NEG = 3          # max negatives per sample (min(len(negative_candid), 3))
IDX_COLS = 6       # [anchor, positive, neg0, neg1, neg2, n_valid]


def _round_up(x, m):
    return ((x + m - 1) // m) * m


def _chip_caps():
    """(tile_s cap, vmem_limit cap) per TPU generation."""
    try:
        kind = jax.devices()[0].device_kind.lower()
    except Exception:
        kind = ""
    if "v5" in kind or "v6" in kind:
        return 512, 100 * 1024 * 1024      # 128 MiB physical VMEM -> big tiles OK
    # v7x (64 MiB VMEM / TC) and unknown chips: conservative caps
    return 256, 56 * 1024 * 1024


def _contrastive_kernel(idx_ref, batch_ref, loss_ref, *, use_bf16):
    """One sample tile.

    idx_ref:   [IDX_COLS, T] int32  (samples on lanes)
    batch_ref: [B, D] float         (resident across all grid steps)
    loss_ref:  [1, T] float32       (lane-dense per-sample losses)
    """
    bt = batch_ref[...]
    n_rows = bt.shape[0]
    idx = idx_ref[...]
    tile = idx.shape[1]

    mm_dtype = jnp.bfloat16 if (use_bf16 and bt.dtype == jnp.float32) else bt.dtype
    bt_mm = bt.astype(mm_dtype)

    # sublane-id grid: sub[b, t] = b  (one-hot selectors & extraction masks)
    sub = jax.lax.broadcasted_iota(jnp.int32, (n_rows, tile), 0)

    # --- gather anchors with a single one-hot MXU matmul (exact gather) ---
    anchor_oh = (sub == idx[0:1, :]).astype(mm_dtype)                    # [B, T]
    anchor = jax.lax.dot_general(                                        # [T, D] f32
        anchor_oh, bt_mm, (((0,), (0,)), ((), ())),
        preferred_element_type=jnp.float32)
    anchor = anchor.astype(mm_dtype)                                     # exact round-trip

    # --- all similarities in one matmul, samples on lanes: sims[b, t] = <batch_b, anchor_t>
    sims = jax.lax.dot_general(                                          # [B, T] f32
        bt_mm, anchor, (((1,), (1,)), ((), ())),
        preferred_element_type=jnp.float32)

    def extract(col):
        sel = sub == idx[col:col + 1, :]                                 # [B, T]
        return jnp.sum(jnp.where(sel, sims, 0.0), axis=0, keepdims=True)  # [1, T]

    pos_sim = extract(1)
    stack = jnp.concatenate(
        [pos_sim] + [extract(2 + k) for k in range(K_NEG)], axis=0)      # [K+1, T]

    cnt = idx[IDX_COLS - 1:IDX_COLS, :]                                  # [1, T] valid-neg count
    row = jax.lax.broadcasted_iota(jnp.int32, (K_NEG + 1, tile), 0)      # [K+1, T]
    valid = row <= cnt                                                   # row 0 (positive) always valid

    max_sim = jnp.max(jnp.where(valid, stack, -jnp.inf), axis=0, keepdims=True)
    denom = jnp.sum(jnp.where(valid, jnp.exp(stack - max_sim), 0.0),
                    axis=0, keepdims=True)
    # -log(exp(pos - m) / denom)  ==  (m - pos) + log(denom)
    loss_ref[...] = (max_sim - pos_sim) + jnp.log(denom)                 # [1, T]


def contrastive_loss_pallas(batch, idx, *, tile_s=None, use_bf16_matmul=True):
    """Per-sample contrastive losses.

    batch: [B, D] float (native dtype; f32 is cast to bf16 for the MXU matmuls).
    idx:   [S, 6] int32 = [anchor, positive, neg0, neg1, neg2, n_valid].
    Returns: [S] float32 per-sample losses.
    """
    batch = jnp.asarray(batch)
    B, D = batch.shape
    S = int(idx.shape[0])

    tile_cap, vmem_cap = _chip_caps()
    if tile_s is None:
        # >= 2 grid steps when possible (v7x shards the "parallel" axis over 2 TCs),
        # lane width a multiple of 128 so stores and epilogue vregs stay dense.
        tile_s = max(128, min(tile_cap, _round_up(pl.cdiv(max(S, 1), 2), 128)))
    S_pad = _round_up(max(S, 1), tile_s)
    num_tiles = S_pad // tile_s

    # Zero-pad: D -> multiple of 128 lanes (dot products unchanged), B -> multiple
    # of 8 sublanes (padded rows are never selected by any index).
    B_pad = _round_up(B, 8)
    D_pad = _round_up(D, 128)
    if (B_pad, D_pad) != (B, D):
        batch = jnp.pad(batch, ((0, B_pad - B), (0, D_pad - D)))

    idx = jnp.asarray(idx, jnp.int32)
    if S_pad != S:
        idx = jnp.pad(idx, ((0, S_pad - S), (0, 0)))   # padded samples -> loss 0, sliced off
    idx_t = idx.T                                      # [IDX_COLS, S_pad], samples on lanes

    # VMEM budget from the actual footprint instead of a flat limit.
    itemsize = batch.dtype.itemsize
    mm_item = 2 if (use_bf16_matmul or batch.dtype == jnp.bfloat16) else itemsize
    need = (B_pad * D_pad * (2 * itemsize + mm_item)        # batch buffers + mm-dtype copy
            + B_pad * tile_s * (4 + mm_item)                # sims f32 + anchor one-hot
            + tile_s * D_pad * (4 + mm_item)                # anchor f32 + mm-dtype copy
            + 2 * IDX_COLS * tile_s * 4 + 2 * tile_s * 4)   # idx / output blocks
    vmem_limit = int(min(vmem_cap, max(32 * 1024 * 1024, need + (4 << 20))))
    # TODO(synk): batches whose resident [B, D] block exceeds VMEM (esp. v7x 64 MiB)
    # need a B-chunked inner "arbitrary" grid axis with flash-style online max/denom.

    kernel = functools.partial(_contrastive_kernel, use_bf16=use_bf16_matmul)

    def build_call(single_buffer_batch):
        if single_buffer_batch:
            # Constant block index -> never re-fetched; single-buffer it to halve VMEM.
            batch_spec = pl.BlockSpec((B_pad, D_pad), lambda i: (0, 0),
                                      pipeline_mode=pl.Buffered(1))
        else:
            batch_spec = pl.BlockSpec((B_pad, D_pad), lambda i: (0, 0))
        return pl.pallas_call(
            kernel,
            out_shape=jax.ShapeDtypeStruct((num_tiles, tile_s), jnp.float32),
            grid=(num_tiles,),
            in_specs=[
                pl.BlockSpec((IDX_COLS, tile_s), lambda i: (0, i)),   # packed indices per tile
                batch_spec,                                           # resident batch
            ],
            out_specs=pl.BlockSpec((1, tile_s), lambda i: (i, 0)),    # lane-dense losses
            compiler_params=pltpu.CompilerParams(
                dimension_semantics=("parallel",),                    # shard tiles across TCs
                vmem_limit_bytes=vmem_limit,
            ),
        )

    try:
        out = build_call(True)(idx_t, batch)
    except Exception:
        # Fallback for JAX builds without BlockSpec(pipeline_mode=pl.Buffered(1)).
        out = build_call(False)(idx_t, batch)

    return out.reshape(-1)[:S]


class ContrastiveLoss:
    def __init__(self, margin=0.2, nu=0, beta=1.2, n_classes=100,
                 beta_constant=False, sampling_method='distance'):
        # margin / beta / nu are stored (as in the torch module) but — exactly as in
        # the reference forward() — they do not enter the per-sample loss math.
        self.margin = margin
        self.n_classes = n_classes
        self.beta_constant = beta_constant
        self.beta_val = beta
        self.beta = beta if beta_constant else jnp.ones((n_classes,), jnp.float32) * beta
        self.nu = nu

    def _sample_triplets(self, labels):
        # TODO(synk): original pipeline uses sklearn KMeans batch clustering and
        # np.random-based cluster_sampler (host-side, data-dependent, stochastic);
        # replaced here with a deterministic label-based anchor/positive/negative
        # sampler so the Pallas hot path is exercised with identical per-sample math.
        labels = np.asarray(labels)
        n = len(labels)
        rows = []
        for i in range(n):
            same = [j for j in range(n) if labels[j] == labels[i] and j != i]
            diff = [j for j in range(n) if labels[j] != labels[i]]
            if not same or not diff:
                continue
            pos = same[i % len(same)]
            negs = diff[:K_NEG]
            cnt = len(negs)
            negs = negs + [negs[-1]] * (K_NEG - cnt)        # pad (masked out in kernel)
            rows.append([i, pos] + negs + [cnt])
        return np.asarray(rows, dtype=np.int32).reshape(-1, IDX_COLS)

    def forward(self, batch, labels):
        idx = self._sample_triplets(labels)
        if idx.shape[0] == 0:
            return jnp.float32(0.0)
        losses = contrastive_loss_pallas(batch, idx)
        return jnp.mean(losses)                             # total_loss / len(samples)


if __name__ == "__main__":
    key = jax.random.PRNGKey(0)
    B, D = 16, 32
    batch = jax.random.normal(key, (B, D), dtype=jnp.float32)
    labels = np.arange(B) % 4                                # 4 classes, 4 items each

    module = ContrastiveLoss(n_classes=4)
    loss = module.forward(batch, labels)
    jax.block_until_ready(loss)

    # Host-side reference with the same per-sample math as the torch module.
    # Inputs are rounded to bf16 to mirror the bf16-operand / f32-accumulate MXU path.
    idx = module._sample_triplets(labels)
    batch_np = np.asarray(jnp.asarray(batch, jnp.bfloat16), dtype=np.float64)
    ref_total = 0.0
    for row in idx:
        a, p = batch_np[row[0]], batch_np[row[1]]
        sims = [float(a @ p)]
        for k in range(int(row[IDX_COLS - 1])):
            sims.append(float(a @ batch_np[row[2 + k]]))
        sims = np.asarray(sims, dtype=np.float64)
        m = sims.max()
        logits = np.exp(sims - m)
        ref_total += -np.log(logits[0] / logits.sum())
    ref = ref_total / len(idx)

    loss_np = np.asarray(loss)
    assert np.isfinite(loss_np)
    np.testing.assert_allclose(loss_np, ref, rtol=5e-3, atol=5e-3)
    print("KERNEL_OK")
</pallas_src>

<mosaic_0001>
module attributes {stable_mosaic.version = 11 : i64} {
  func.func @_contrastive_kernel(%arg0: i32, %arg1: memref<6x128xi32, #tpu.memory_space<vmem>>, %arg2: memref<16x128xf32, #tpu.memory_space<vmem>>, %arg3: memref<1x128xf32, #tpu.memory_space<vmem>>) attributes {dimension_semantics = [#tpu.dimension_semantics<parallel>], iteration_bounds = array<i64: 1>, scalar_prefetch = 0 : i64, scratch_operands = 0 : i64, tpu.core_type = #tpu.core_type<tc>, window_params = [{transform_indices = @transform_0, window_bounds = array<i64: 6, 128>}, {pipeline_mode = #tpu.pipeline_mode<synchronous>, transform_indices = @transform_1, window_bounds = array<i64: 16, 128>}, {transform_indices = @transform_2, window_bounds = array<i64: 1, 128>}]} {
    %c0 = arith.constant 0 : index
    %c0_0 = arith.constant 0 : index
    %0 = vector.load %arg2[%c0, %c0_0] : memref<16x128xf32, #tpu.memory_space<vmem>>, vector<16x128xf32>
    %c0_1 = arith.constant 0 : index
    %c0_2 = arith.constant 0 : index
    %1 = vector.load %arg1[%c0_1, %c0_2] : memref<6x128xi32, #tpu.memory_space<vmem>>, vector<6x128xi32>
    %2 = arith.truncf %0 : vector<16x128xf32> to vector<16x128xbf16>
    %3 = tpu.iota {dimensions = array<i32: 0>} : vector<16x128xi32>
    %4 = vector.extract_strided_slice %1 {offsets = [0, 0], sizes = [1, 128], strides = [1, 1]} : vector<6x128xi32> to vector<1x128xi32>
    %5 = vector.broadcast %4 : vector<1x128xi32> to vector<16x128xi32>
    %6 = arith.cmpi eq, %3, %5 : vector<16x128xi32>
    %7 = arith.extui %6 : vector<16x128xi1> to vector<16x128xi32>
    %8 = arith.sitofp %7 : vector<16x128xi32> to vector<16x128xf32>
    %9 = arith.truncf %8 : vector<16x128xf32> to vector<16x128xbf16>
    %cst = arith.constant dense<0.000000e+00> : vector<128x128xf32>
    %10 = tpu.matmul %9, %2, %cst {dimension_numbers = #tpu.dot_dimension_numbers<[0], [0], [1], [1], [0, 1, 1, 1], [], []>} : vector<16x128xbf16>, vector<16x128xbf16>, vector<128x128xf32> -> vector<128x128xf32>
    %11 = arith.truncf %10 : vector<128x128xf32> to vector<128x128xbf16>
    %cst_3 = arith.constant dense<0.000000e+00> : vector<16x128xf32>
    %12 = tpu.matmul %2, %11, %cst_3 {dimension_numbers = #tpu.dot_dimension_numbers<[1], [1], [0], [0], [0, 0, 1, 0], [], []>} : vector<16x128xbf16>, vector<128x128xbf16>, vector<16x128xf32> -> vector<16x128xf32>
    %13 = vector.extract_strided_slice %1 {offsets = [1, 0], sizes = [1, 128], strides = [1, 1]} : vector<6x128xi32> to vector<1x128xi32>
    %14 = vector.broadcast %13 : vector<1x128xi32> to vector<16x128xi32>
    %15 = arith.cmpi eq, %3, %14 : vector<16x128xi32>
    %cst_4 = arith.constant 0.000000e+00 : f32
    %16 = vector.broadcast %cst_4 : f32 to vector<16x128xf32>
    %17 = arith.select %15, %12, %16 : vector<16x128xi1>, vector<16x128xf32>
    %cst_5 = arith.constant dense<0.000000e+00> : vector<128xf32>
    %18 = vector.multi_reduction <add>, %17, %cst_5 [0] : vector<16x128xf32> to vector<128xf32>
    %19 = vector.shape_cast %18 : vector<128xf32> to vector<1x128xf32>
    %20 = vector.extract_strided_slice %1 {offsets = [2, 0], sizes = [1, 128], strides = [1, 1]} : vector<6x128xi32> to vector<1x128xi32>
    %21 = vector.broadcast %20 : vector<1x128xi32> to vector<16x128xi32>
    %22 = arith.cmpi eq, %3, %21 : vector<16x128xi32>
    %cst_6 = arith.constant 0.000000e+00 : f32
    %23 = vector.broadcast %cst_6 : f32 to vector<16x128xf32>
    %24 = arith.select %22, %12, %23 : vector<16x128xi1>, vector<16x128xf32>
    %cst_7 = arith.constant dense<0.000000e+00> : vector<128xf32>
    %25 = vector.multi_reduction <add>, %24, %cst_7 [0] : vector<16x128xf32> to vector<128xf32>
    %26 = vector.shape_cast %25 : vector<128xf32> to vector<1x128xf32>
    %27 = vector.extract_strided_slice %1 {offsets = [3, 0], sizes = [1, 128], strides = [1, 1]} : vector<6x128xi32> to vector<1x128xi32>
    %28 = vector.broadcast %27 : vector<1x128xi32> to vector<16x128xi32>
    %29 = arith.cmpi eq, %3, %28 : vector<16x128xi32>
    %cst_8 = arith.constant 0.000000e+00 : f32
    %30 = vector.broadcast %cst_8 : f32 to vector<16x128xf32>
    %31 = arith.select %29, %12, %30 : vector<16x128xi1>, vector<16x128xf32>
    %cst_9 = arith.constant dense<0.000000e+00> : vector<128xf32>
    %32 = vector.multi_reduction <add>, %31, %cst_9 [0] : vector<16x128xf32> to vector<128xf32>
    %33 = vector.shape_cast %32 : vector<128xf32> to vector<1x128xf32>
    %34 = vector.extract_strided_slice %1 {offsets = [4, 0], sizes = [1, 128], strides = [1, 1]} : vector<6x128xi32> to vector<1x128xi32>
    %35 = vector.broadcast %34 : vector<1x128xi32> to vector<16x128xi32>
    %36 = arith.cmpi eq, %3, %35 : vector<16x128xi32>
    %cst_10 = arith.constant 0.000000e+00 : f32
    %37 = vector.broadcast %cst_10 : f32 to vector<16x128xf32>
    %38 = arith.select %36, %12, %37 : vector<16x128xi1>, vector<16x128xf32>
    %cst_11 = arith.constant dense<0.000000e+00> : vector<128xf32>
    %39 = vector.multi_reduction <add>, %38, %cst_11 [0] : vector<16x128xf32> to vector<128xf32>
    %40 = vector.shape_cast %39 : vector<128xf32> to vector<1x128xf32>
    %41 = tpu.concatenate %19, %26, %33, %40 in 0 : vector<1x128xf32>, vector<1x128xf32>, vector<1x128xf32>, vector<1x128xf32> -> vector<4x128xf32>
    %42 = vector.extract_strided_slice %1 {offsets = [5, 0], sizes = [1, 128], strides = [1, 1]} : vector<6x128xi32> to vector<1x128xi32>
    %43 = tpu.iota {dimensions = array<i32: 0>} : vector<4x128xi32>
    %44 = vector.broadcast %42 : vector<1x128xi32> to vector<4x128xi32>
    %45 = arith.cmpi sle, %43, %44 : vector<4x128xi32>
    %cst_12 = arith.constant 0xFF800000 : f32
    %46 = vector.broadcast %cst_12 : f32 to vector<4x128xf32>
    %47 = arith.select %45, %41, %46 : vector<4x128xi1>, vector<4x128xf32>
    %cst_13 = arith.constant dense<0xFF800000> : vector<128xf32>
    %48 = vector.multi_reduction <maximumf>, %47, %cst_13 [0] : vector<4x128xf32> to vector<128xf32>
    %49 = vector.shape_cast %48 : vector<128xf32> to vector<1x128xf32>
    %50 = vector.broadcast %49 : vector<1x128xf32> to vector<4x128xf32>
    %51 = arith.subf %41, %50 : vector<4x128xf32>
    %52 = math.exp %51 : vector<4x128xf32>
    %cst_14 = arith.constant 0.000000e+00 : f32
    %53 = vector.broadcast %cst_14 : f32 to vector<4x128xf32>
    %54 = arith.select %45, %52, %53 : vector<4x128xi1>, vector<4x128xf32>
    %cst_15 = arith.constant dense<0.000000e+00> : vector<128xf32>
    %55 = vector.multi_reduction <add>, %54, %cst_15 [0] : vector<4x128xf32> to vector<128xf32>
    %56 = vector.shape_cast %55 : vector<128xf32> to vector<1x128xf32>
    %57 = arith.subf %49, %19 : vector<1x128xf32>
    %58 = math.log %56 : vector<1x128xf32>
    %59 = arith.addf %57, %58 : vector<1x128xf32>
    %c0_16 = arith.constant 0 : index
    %c0_17 = arith.constant 0 : index
    %60 = vector.load %arg3[%c0_16, %c0_17] : memref<1x128xf32, #tpu.memory_space<vmem>>, vector<1x128xf32>
    tpu.vector_store %arg3[%c0_16, %c0_17], %59 {strides = array<i32>} : memref<1x128xf32, #tpu.memory_space<vmem>>, vector<1x128xf32>,
    return
  }
  func.func @transform_0(%arg0: i32) -> (i32, i32) {
    %c0_i32 = arith.constant 0 : i32
    %c0_i32_0 = arith.constant 0 : i32
    return %c0_i32, %arg0 : i32, i32
  }
  func.func @transform_1(%arg0: i32) -> (i32, i32) {
    %c0_i32 = arith.constant 0 : i32
    %c0_i32_0 = arith.constant 0 : i32
    %c0_i32_1 = arith.constant 0 : i32
    return %c0_i32, %c0_i32_0 : i32, i32
  }
  func.func @transform_2(%arg0: i32) -> (i32, i32) {
    %c0_i32 = arith.constant 0 : i32
    %c0_i32_0 = arith.constant 0 : i32
    return %arg0, %c0_i32 : i32, i32
  }
}

module attributes {stable_mosaic.version = 11 : i64} {
  func.func @_contrastive_kernel(%arg0: i32, %arg1: memref<6x128xi32, #tpu.memory_space<vmem>>, %arg2: memref<16x128xf32, #tpu.memory_space<vmem>>, %arg3: memref<1x128xf32, #tpu.memory_space<vmem>>) attributes {dimension_semantics = [#tpu.dimension_semantics<parallel>], iteration_bounds = array<i64: 1>, scalar_prefetch = 0 : i64, scratch_operands = 0 : i64, tpu.core_type = #tpu.core_type<tc>, window_params = [{transform_indices = @transform_0, window_bounds = array<i64: 6, 128>}, {pipeline_mode = #tpu.pipeline_mode<synchronous>, transform_indices = @transform_1, window_bounds = array<i64: 16, 128>}, {transform_indices = @transform_2, window_bounds = array<i64: 1, 128>}]} {
    %c0 = arith.constant 0 : index
    %c0_0 = arith.constant 0 : index
    %0 = vector.load %arg2[%c0, %c0_0] : memref<16x128xf32, #tpu.memory_space<vmem>>, vector<16x128xf32>
    %c0_1 = arith.constant 0 : index
    %c0_2 = arith.constant 0 : index
    %1 = vector.load %arg1[%c0_1, %c0_2] : memref<6x128xi32, #tpu.memory_space<vmem>>, vector<6x128xi32>
    %2 = arith.truncf %0 : vector<16x128xf32> to vector<16x128xbf16>
    %3 = tpu.iota {dimensions = array<i32: 0>} : vector<16x128xi32>
    %4 = vector.extract_strided_slice %1 {offsets = [0, 0], sizes = [1, 128], strides = [1, 1]} : vector<6x128xi32> to vector<1x128xi32>
    %5 = vector.broadcast %4 : vector<1x128xi32> to vector<16x128xi32>
    %6 = arith.cmpi eq, %3, %5 : vector<16x128xi32>
    %7 = arith.extui %6 : vector<16x128xi1> to vector<16x128xi32>
    %8 = arith.sitofp %7 : vector<16x128xi32> to vector<16x128xf32>
    %9 = arith.truncf %8 : vector<16x128xf32> to vector<16x128xbf16>
    %cst = arith.constant dense<0.000000e+00> : vector<128x128xf32>
    %10 = tpu.matmul %9, %2, %cst {dimension_numbers = #tpu.dot_dimension_numbers<[0], [0], [1], [1], [0, 1, 1, 1], [], []>} : vector<16x128xbf16>, vector<16x128xbf16>, vector<128x128xf32> -> vector<128x128xf32>
    %11 = arith.truncf %10 : vector<128x128xf32> to vector<128x128xbf16>
    %cst_3 = arith.constant dense<0.000000e+00> : vector<16x128xf32>
    %12 = tpu.matmul %2, %11, %cst_3 {dimension_numbers = #tpu.dot_dimension_numbers<[1], [1], [0], [0], [0, 0, 1, 0], [], []>} : vector<16x128xbf16>, vector<128x128xbf16>, vector<16x128xf32> -> vector<16x128xf32>
    %13 = vector.extract_strided_slice %1 {offsets = [1, 0], sizes = [1, 128], strides = [1, 1]} : vector<6x128xi32> to vector<1x128xi32>
    %14 = vector.broadcast %13 : vector<1x128xi32> to vector<16x128xi32>
    %15 = arith.cmpi eq, %3, %14 : vector<16x128xi32>
    %cst_4 = arith.constant 0.000000e+00 : f32
    %16 = vector.broadcast %cst_4 : f32 to vector<16x128xf32>
    %17 = arith.select %15, %12, %16 : vector<16x128xi1>, vector<16x128xf32>
    %cst_5 = arith.constant dense<0.000000e+00> : vector<128xf32>
    %18 = vector.multi_reduction <add>, %17, %cst_5 [0] : vector<16x128xf32> to vector<128xf32>
    %19 = vector.shape_cast %18 : vector<128xf32> to vector<1x128xf32>
    %20 = vector.extract_strided_slice %1 {offsets = [2, 0], sizes = [1, 128], strides = [1, 1]} : vector<6x128xi32> to vector<1x128xi32>
    %21 = vector.broadcast %20 : vector<1x128xi32> to vector<16x128xi32>
    %22 = arith.cmpi eq, %3, %21 : vector<16x128xi32>
    %cst_6 = arith.constant 0.000000e+00 : f32
    %23 = vector.broadcast %cst_6 : f32 to vector<16x128xf32>
    %24 = arith.select %22, %12, %23 : vector<16x128xi1>, vector<16x128xf32>
    %cst_7 = arith.constant dense<0.000000e+00> : vector<128xf32>
    %25 = vector.multi_reduction <add>, %24, %cst_7 [0] : vector<16x128xf32> to vector<128xf32>
    %26 = vector.shape_cast %25 : vector<128xf32> to vector<1x128xf32>
    %27 = vector.extract_strided_slice %1 {offsets = [3, 0], sizes = [1, 128], strides = [1, 1]} : vector<6x128xi32> to vector<1x128xi32>
    %28 = vector.broadcast %27 : vector<1x128xi32> to vector<16x128xi32>
    %29 = arith.cmpi eq, %3, %28 : vector<16x128xi32>
    %cst_8 = arith.constant 0.000000e+00 : f32
    %30 = vector.broadcast %cst_8 : f32 to vector<16x128xf32>
    %31 = arith.select %29, %12, %30 : vector<16x128xi1>, vector<16x128xf32>
    %cst_9 = arith.constant dense<0.000000e+00> : vector<128xf32>
    %32 = vector.multi_reduction <add>, %31, %cst_9 [0] : vector<16x128xf32> to vector<128xf32>
    %33 = vector.shape_cast %32 : vector<128xf32> to vector<1x128xf32>
    %34 = vector.extract_strided_slice %1 {offsets = [4, 0], sizes = [1, 128], strides = [1, 1]} : vector<6x128xi32> to vector<1x128xi32>
    %35 = vector.broadcast %34 : vector<1x128xi32> to vector<16x128xi32>
    %36 = arith.cmpi eq, %3, %35 : vector<16x128xi32>
    %cst_10 = arith.constant 0.000000e+00 : f32
    %37 = vector.broadcast %cst_10 : f32 to vector<16x128xf32>
    %38 = arith.select %36, %12, %37 : vector<16x128xi1>, vector<16x128xf32>
    %cst_11 = arith.constant dense<0.000000e+00> : vector<128xf32>
    %39 = vector.multi_reduction <add>, %38, %cst_11 [0] : vector<16x128xf32> to vector<128xf32>
    %40 = vector.shape_cast %39 : vector<128xf32> to vector<1x128xf32>
    %41 = tpu.concatenate %19, %26, %33, %40 in 0 : vector<1x128xf32>, vector<1x128xf32>, vector<1x128xf32>, vector<1x128xf32> -> vector<4x128xf32>
    %42 = vector.extract_strided_slice %1 {offsets = [5, 0], sizes = [1, 128], strides = [1, 1]} : vector<6x128xi32> to vector<1x128xi32>
    %43 = tpu.iota {dimensions = array<i32: 0>} : vector<4x128xi32>
    %44 = vector.broadcast %42 : vector<1x128xi32> to vector<4x128xi32>
    %45 = arith.cmpi sle, %43, %44 : vector<4x128xi32>
    %cst_12 = arith.constant 0xFF800000 : f32
    %46 = vector.broadcast %cst_12 : f32 to vector<4x128xf32>
    %47 = arith.select %45, %41, %46 : vector<4x128xi1>, vector<4x128xf32>
    %cst_13 = arith.constant dense<0xFF800000> : vector<128xf32>
    %48 = vector.multi_reduction <maximumf>, %47, %cst_13 [0] : vector<4x128xf32> to vector<128xf32>
    %49 = vector.shape_cast %48 : vector<128xf32> to vector<1x128xf32>
    %50 = vector.broadcast %49 : vector<1x128xf32> to vector<4x128xf32>
    %51 = arith.subf %41, %50 : vector<4x128xf32>
    %52 = math.exp %51 : vector<4x128xf32>
    %cst_14 = arith.constant 0.000000e+00 : f32
    %53 = vector.broadcast %cst_14 : f32 to vector<4x128xf32>
    %54 = arith.select %45, %52, %53 : vector<4x128xi1>, vector<4x128xf32>
    %cst_15 = arith.constant dense<0.000000e+00> : vector<128xf32>
    %55 = vector.multi_reduction <add>, %54, %cst_15 [0] : vector<4x128xf32> to vector<128xf32>
    %56 = vector.shape_cast %55 : vector<128xf32> to vector<1x128xf32>
    %57 = arith.subf %49, %19 : vector<1x128xf32>
    %58 = math.log %56 : vector<1x128xf32>
    %59 = arith.addf %57, %58 : vector<1x128xf32>
    %c0_16 = arith.constant 0 : index
    %c0_17 = arith.constant 0 : index
    %60 = vector.load %arg3[%c0_16, %c0_17] : memref<1x128xf32, #tpu.memory_space<vmem>>, vector<1x128xf32>
    tpu.vector_store %arg3[%c0_16, %c0_17], %59 {strides = array<i32>} : memref<1x128xf32, #tpu.memory_space<vmem>>, vector<1x128xf32>,
    return
  }
  func.func @transform_0(%arg0: i32) -> (i32, i32) {
    %c0_i32 = arith.constant 0 : i32
    %c0_i32_0 = arith.constant 0 : i32
    return %c0_i32, %arg0 : i32, i32
  }
  func.func @transform_1(%arg0: i32) -> (i32, i32) {
    %c0_i32 = arith.constant 0 : i32
    %c0_i32_0 = arith.constant 0 : i32
    %c0_i32_1 = arith.constant 0 : i32
    return %c0_i32, %c0_i32_0 : i32, i32
  }
  func.func @transform_2(%arg0: i32) -> (i32, i32) {
    %c0_i32 = arith.constant 0 : i32
    %c0_i32_0 = arith.constant 0 : i32
    return %arg0, %c0_i32 : i32, i32
  }
}

</mosaic_0001>

<bundles_post_ra>
// kernel: tpu_custom_call.1
= control target key start
LH: loop header
LB: loop body
LE: loop exit
PB: predicated region body
PF: predicated region fallthrough
CT: control target
= control target key end

     0   :  { %7 = vsyncpa [#allocation3], 0  ;;  %s631_s0 = inlined_call_operand.hbm [shape: s32[6,128], index: 0, kind: input, shape index: {}]   ;;  %s632_s1 = inlined_call_operand.hbm [shape: f32[16,128], index: 1, kind: input, shape index: {}]   ;;  %s633_s2 = inlined_call_operand.hbm [shape: f32[1,128], index: 2, kind: output, shape index: {}]  }
   0x1   :  { %8 = vsyncpa [#allocation6], 0 }
   0x2   :  { %9 = vsyncpa [#allocation4], 0  ;;  %s506_s9 = smov [#allocation2]   ;;  %s507_s11 = smov [#allocation5]  }
   0x3   :  { %s16_s10 = sshll.u32 %s506_s9, 4  ;;  %s25_s12 = sshll.u32 %s507_s11, 4  ;;  %s17_s10 = int_to_ptr.vmem [resolvable:$true] %s16_s10  ;;  %s528_s12 = int_to_ptr.vmem [resolvable:$true] %s25_s12 }
   0x4   :  { %s434_s15 = scalar_lea.hbm %s631_s0, 128 }
   0x5   :  { %p435_p0 = scmp.ne.s32.totalorder %s631_s0, %s434_s15  ;;  %p438_p1 = scmp.lt.u32.totalorder %s434_s15, %s631_s0 }
   0x7   :  { %p440_p2 = pnand %p438_p1, %p435_p0 }
   0x9   :  { %443 = shalt.err (!%p440_p2)
}
   0xa   :  { %s444_s20 = scalar_lea.vmem %s17_s10, 128  ;;  %p449_p4 = scmp.lt.s32.totalorder %s17_s10, %s17_s10 }
   0xb   :  { %p445_p3 = scmp.ne.s32.totalorder %s17_s10, %s444_s20  ;;  %p450_p5 = scmp.lt.s32.totalorder %s444_s20, %s444_s20 }
   0xd   :  { %p451_p6 = por %p450_p5, %p449_p4 }
   0xf   :  { %p452_p7 = pnand %p451_p6, %p445_p3 }
  0x11   :  { %455 = shalt.err (!%p452_p7)
}
  0x12   :  { %19 = dma.hbm_to_vmem [thread:$0]  %s631_s0, 128, %s17_s10, [#allocation3]  }
  0x13   :  { %s456_s25 = scalar_lea.hbm %s632_s1, 256 }
  0x14   :  { %p457_p8 = scmp.ne.s32.totalorder %s632_s1, %s456_s25  ;;  %p460_p9 = scmp.lt.u32.totalorder %s456_s25, %s632_s1 }
  0x16   :  { %p462_p10 = pnand %p460_p9, %p457_p8 }
  0x18   :  { %465 = shalt.err (!%p462_p10)
}
  0x19   :  { %s466_s30 = scalar_lea.vmem %s528_s12, 256  ;;  %p471_p12 = scmp.lt.s32.totalorder %s528_s12, %s528_s12 }
  0x1a   :  { %p467_p11 = scmp.ne.s32.totalorder %s528_s12, %s466_s30  ;;  %p472_p13 = scmp.lt.s32.totalorder %s466_s30, %s466_s30 }
  0x1c   :  { %p473_p0 = por %p472_p13, %p471_p12 }
  0x1e   :  { %p474_p1 = pnand %p473_p0, %p467_p11 }
  0x20   :  { %477 = shalt.err (!%p474_p1)
}
  0x21   :  { %s508_s0 = smov 128   ;;  %s509_s3 = smov 8  }
  0x22   :  { %31 = dma.hbm_to_vmem [thread:$0]  %s632_s1, 256, %s528_s12, [#allocation6], %s508_s0, %s508_s0, %s509_s3  }
  0x23   :  { %500 = dma.done.wait [#allocation3], 128  }
  0x24   :  { %501 = vsyncadd [#allocation3], 4294967168 }
  0x25   :  { %502 = dma.done.wait [#allocation6], 256  }
  0x26   :  { %503 = vsyncadd [#allocation6], 4294967040  ;;  %v43_v0 = vlaneseq  ;;  %v510_v1 = vmov 0.0   ;;  %v566_v5 = vld [vmem:[#allocation2] sm:$0x3f]  ;;  %v39_v6 = vld [vmem:[#allocation5] sm:$0xff] }
  0x27   :  { %402 = vmatprep.subr.bf16.mxu1 %v510_v1  ;;  %v40_v7 = vld [vmem:[#allocation5 + $0x8] sm:$0xff]  ;;  %vm73_vm2 = vcmask 130048   ;;  %vm511_vm3 = vmmov 0   ;;  %vm304_vm12 = vcmask 1040384   ;;  %vm306_vm13 = vcmask 1041408   ;;  %s512_s1 = smov [#allocation7]  }
  0x28   :  { %v560_v2 = vshrl.u32 %v43_v0, 7  ;;  %v569_v9 = vpack.c.bf16 %v40_v7, %v39_v6  ;;  %418 = vmatprep.mubr.msk.bf16.mxu1 %vm511_vm3, %v510_v1  ;;  %vm308_vm14 = vcmask 1042432   ;;  %s346_s6 = sshll.u32 %s512_s1, 4  ;;  %s347_s6 = int_to_ptr.vmem [resolvable:$true] %s346_s6 }
  0x29   :  { %s478_s7 = scalar_lea.vmem %s347_s6, 16  ;;  %s482_s8 = scalar_lea.vmem %s347_s6, 32 }
  0x2a   :  { %v48_v3 = vsub.s32 0, %v560_v2  ;;  %v564_v4 = vadd.s32 8, %v560_v2  ;;  %384 = vmatprep.subr.bf16.mxu0 %v569_v9  ;;  %v246_v45 = vsub.s32 1, %v560_v2  ;;  %v261_v46 = vsub.s32 2, %v560_v2  ;;  %p479_p2 = scmp.ne.s32.totalorder %s347_s6, %s478_s7  ;;  %p483_p3 = scmp.lt.s32.totalorder %s347_s6, %s347_s6 }
  0x2b   :  { %385 = vmatpush3.bf16.msra.mxu0 %v569_v9  ;;  %v276_v47 = vsub.s32 3, %v560_v2  ;;  %v291_v48 = vsub.s32 4, %v560_v2  ;;  %p484_p4 = scmp.lt.s32.totalorder %s482_s8, %s478_s7 }
  0x2c   :  { %v49_v8 = vrot.slane %v566_v5, %v48_v3  ;;  %v247_v49 = vrot.slane %v566_v5, %v246_v45  ;;  %v262_v50 = vrot.slane %v566_v5, %v261_v46 }
  0x2d   :  { %v277_v51 = vrot.slane %v566_v5, %v276_v47  ;;  %v292_v52 = vrot.slane %v566_v5, %v291_v48  ;;  %p485_p5 = por %p484_p4, %p483_p3 }
  0x2e   :  { %vm50_vm0 = vcmp.eq.s32.totalorder %v560_v2, %v49_v8  ;;  %vm51_vm1 = vcmp.eq.s32.totalorder %v564_v4, %v49_v8  ;;  %vm248_vm4 = vcmp.eq.s32.totalorder %v560_v2, %v247_v49  ;;  %vm263_vm5 = vcmp.eq.s32.totalorder %v560_v2, %v262_v50 }
  0x2f   :  { %v356_v10 = vsel %vm50_vm0, 1.0, %v510_v1  ;;  %v357_v11 = vsel %vm51_vm1, 1.0, %v510_v1  ;;  %vm278_vm6 = vcmp.eq.s32.totalorder %v560_v2, %v277_v51  ;;  %vm293_vm7 = vcmp.eq.s32.totalorder %v560_v2, %v292_v52  ;;  %p486_p6 = pnand %p485_p5, %p479_p2 }
  0x30   :  { %v56_v12 = vpack.c.bf16 %v357_v11, %v356_v10  ;;  %vm249_vm8 = vcmp.eq.s32.totalorder %v564_v4, %v247_v49  ;;  %vm264_vm9 = vcmp.eq.s32.totalorder %v564_v4, %v262_v50  ;;  %vm279_vm10 = vcmp.eq.s32.totalorder %v564_v4, %v277_v51 }
  0x31   :  { %vm294_vm11 = vcmp.eq.s32.totalorder %v564_v4, %v292_v52  ;;  %vm316_vm0 = vcmask 1043456  }
  0x32   :  { %57 = vxpose.xlu0.c.b16.start.end [1/1] (short) %v56_v12, 128 }
  0x98   :  { %v65_v13 = vpop.trf.xlu0 }
  0x99   :  { %386 = vmatprep.mubr.msk.bf16.mxu0 %vm73_vm2, %v65_v13 }
  0x9c   :  { %v66_v14 = vpop.trf.xlu0 }
  0x9d   :  { %387 = vmatmul.mubr.msk.bf16.vlgmr.msra.gmra.mrb[0].mxu0 %vm73_vm2, %v66_v14 }
  0xa0   :  { %v67_v15 = vpop.trf.xlu0 }
  0xa1   :  { %390 = vmatprep.mubr.msk.bf16.mxu0 %vm73_vm2, %v67_v15  ;;  %v312_v15 = vsub.s32 5, %v560_v2 }
  0xa4   :  { %v68_v16 = vpop.trf.xlu0 }
  0xa5   :  { %391 = vmatmul.mubr.msk.bf16.gmra.mrb[4].mxu0 %vm73_vm2, %v68_v16 }
  0xa8   :  { %v69_v17 = vpop.trf.xlu0 }
  0xa9   :  { %394 = vmatprep.mubr.msk.bf16.mxu0 %vm73_vm2, %v69_v17 }
  0xac   :  { %v70_v18 = vpop.trf.xlu0 }
  0xad   :  { %395 = vmatmul.mubr.msk.bf16.gmra.mrb[8].mxu0 %vm73_vm2, %v70_v18 }
  0xb0   :  { %v71_v19 = vpop.trf.xlu0 }
  0xb1   :  { %398 = vmatprep.mubr.msk.bf16.mxu0 %vm73_vm2, %v71_v19 }
  0xb4   :  { %v72_v20 = vpop.trf.xlu0 }
  0xb5   :  { %399 = vmatmul.mubr.msk.bf16.gmra.mrb[12].mxu0 %vm73_vm2, %v72_v20 }
 0x170   :  { %v388_v21 = vpop.f32.mrb[0].mxu0 }
 0x171   :  { %v132_v22 = vpop.f32.mrb[1].mxu0 }
 0x172   :  { %v389_v23 = vpop.f32.mrb[2].mxu0 }
 0x173   :  { %v196_v24 = vpack.c.bf16 %v389_v23, %v388_v21  ;;  %v135_v25 = vpop.f32.mrb[3].mxu0 }
 0x174   :  { %v195_v26 = vpack.c.bf16 %v135_v25, %v132_v22 }
 0x176   :  { %403 = vmatpush3.bf16.xpose.msra.mxu1 %v195_v26 }
 0x177   :  { %404 = vmatprep.subr.bf16.mxu1 %v510_v1 }
 0x178   :  { %v392_v27 = vpop.f32.mrb[4].mxu0 }
 0x179   :  { %v148_v28 = vpop.f32.mrb[5].mxu0 }
 0x17a   :  { %v393_v29 = vpop.f32.mrb[6].mxu0 }
 0x17b   :  { %v198_v30 = vpack.c.bf16 %v393_v29, %v392_v27  ;;  %v151_v31 = vpop.f32.mrb[7].mxu0 }
 0x17c   :  { %v197_v32 = vpack.c.bf16 %v151_v31, %v148_v28 }
 0x17e   :  { %405 = vmatpush3.bf16.xpose.msra.mxu1 %v196_v24  ;;  %v313_v24 = vrot.slane %v566_v5, %v312_v15 }
 0x17f   :  { %406 = vmatprep.subr.bf16.mxu1 %v510_v1 }
 0x180   :  { %v396_v33 = vpop.f32.mrb[8].mxu0  ;;  %vm314_vm15 = vcmp.le.s32.totalorder %v560_v2, %v313_v24 }
 0x181   :  { %v164_v34 = vpop.f32.mrb[9].mxu0 }
 0x182   :  { %v397_v35 = vpop.f32.mrb[10].mxu0 }
 0x183   :  { %v200_v36 = vpack.c.bf16 %v397_v35, %v396_v33  ;;  %v167_v37 = vpop.f32.mrb[11].mxu0 }
 0x184   :  { %v199_v38 = vpack.c.bf16 %v167_v37, %v164_v34 }
 0x186   :  { %407 = vmatpush3.bf16.xpose.msra.mxu1 %v197_v32 }
 0x187   :  { %408 = vmatprep.subr.bf16.mxu1 %v510_v1 }
 0x188   :  { %v400_v39 = vpop.f32.mrb[12].mxu0 }
 0x189   :  { %v180_v40 = vpop.f32.mrb[13].mxu0 }
 0x18a   :  { %v401_v41 = vpop.f32.mrb[14].mxu0 }
 0x18b   :  { %v202_v42 = vpack.c.bf16 %v401_v41, %v400_v39  ;;  %v183_v43 = vpop.f32.mrb[15].mxu0 }
 0x18c   :  { %v201_v44 = vpack.c.bf16 %v183_v43, %v180_v40 }
 0x18e   :  { %409 = vmatpush3.bf16.xpose.msra.mxu1 %v198_v30 }
 0x18f   :  { %410 = vmatprep.subr.bf16.mxu1 %v510_v1 }
 0x196   :  { %411 = vmatpush3.bf16.xpose.msra.mxu1 %v199_v38 }
 0x197   :  { %412 = vmatprep.subr.bf16.mxu1 %v510_v1 }
 0x19e   :  { %413 = vmatpush3.bf16.xpose.msra.mxu1 %v200_v36 }
 0x19f   :  { %414 = vmatprep.subr.bf16.mxu1 %v510_v1 }
 0x1a6   :  { %415 = vmatpush3.bf16.xpose.msra.mxu1 %v201_v44 }
 0x1a7   :  { %416 = vmatprep.subr.bf16.mxu1 %v510_v1 }
 0x1ae   :  { %417 = vmatpush3.bf16.xpose.msra.mxu1 %v202_v42 }
 0x1b5   :  { %419 = vmatmul.mubr.bf16.vlgmr.msra.gmra.mrb[0].mxu1 %v569_v9 }
 0x288   :  { %v237_v53 = vpop.f32.mrb[0].mxu1 }
 0x289   :  { %v420_v54 = vpop.f32.mrb[1].mxu1  ;;  %v250_v55 = vsel %vm248_vm4, %v237_v53, 0.0  ;;  %v265_v56 = vsel %vm263_vm5, %v237_v53, 0.0  ;;  %v280_v57 = vsel %vm278_vm6, %v237_v53, 0.0  ;;  %v295_v58 = vsel %vm293_vm7, %v237_v53, 0.0 }
 0x28a   :  { %v240_v59 = vpop.f32.mrb[2].mxu1 }
 0x28b   :  { %v251_v60 = vsel %vm249_vm8, %v240_v59, 0.0  ;;  %v266_v61 = vsel %vm264_vm9, %v240_v59, 0.0  ;;  %v281_v62 = vsel %vm279_vm10, %v240_v59, 0.0  ;;  %v296_v63 = vsel %vm294_vm11, %v240_v59, 0.0  ;;  %v421_v0 = vpop.f32.mrb[3].mxu1 }
 0x28c   :  { %v252_v1 = vadd.f32 %v251_v60, %v250_v55  ;;  %v267_v3 = vadd.f32 %v266_v61, %v265_v56  ;;  %v282_v6 = vadd.f32 %v281_v62, %v280_v57  ;;  %v297_v7 = vadd.f32 %v296_v63, %v295_v58 }
 0x28e   :  { %v253_v8 = vrot.slane %v252_v1, 4  ;;  %v268_v9 = vrot.slane %v267_v3, 4  ;;  %v283_v10 = vrot.slane %v282_v6, 4  ;;  %v298_v11 = vrot.slane %v297_v7, 4 }
 0x290   :  { %v254_v4 = vadd.f32 %v253_v8, %v252_v1  ;;  %v269_v12 = vadd.f32 %v268_v9, %v267_v3  ;;  %v284_v13 = vadd.f32 %v283_v10, %v282_v6  ;;  %v299_v14 = vadd.f32 %v298_v11, %v297_v7 }
 0x292   :  { %v255_v16 = vrot.slane %v254_v4, 2  ;;  %v270_v17 = vrot.slane %v269_v12, 2  ;;  %v285_v18 = vrot.slane %v284_v13, 2  ;;  %v300_v19 = vrot.slane %v299_v14, 2 }
 0x294   :  { %v271_v20 = vadd.f32 %v270_v17, %v269_v12  ;;  %v286_v21 = vadd.f32 %v285_v18, %v284_v13  ;;  %v301_v22 = vadd.f32 %v300_v19, %v299_v14  ;;  %v256_v23 = vadd.f32 %v255_v16, %v254_v4 }
 0x296   :  { %v272_v25 = vrot.slane %v271_v20, 1  ;;  %v287_v26 = vrot.slane %v286_v21, 1  ;;  %v302_v27 = vrot.slane %v301_v22, 1  ;;  %v257_v28 = vrot.slane %v256_v23, 1 }
 0x298   :  { %v273_v29 = vadd.f32 %v272_v25, %v271_v20  ;;  %v288_v30 = vadd.f32 %v287_v26, %v286_v21  ;;  %v258_v31 = vadd.f32 %v257_v28, %v256_v23  ;;  %v303_v32 = vadd.f32 %v302_v27, %v301_v22 }
 0x29a   :  { %v305_v33 = vsel %vm304_vm12, %v258_v31, %v273_v29 }
 0x29b   :  { %v307_v34 = vsel %vm306_vm13, %v305_v33, %v288_v30 }
 0x29c   :  { %v309_v35 = vsel %vm308_vm14, %v307_v34, %v303_v32 }
 0x29d   :  { %v315_v5 = vsel %vm314_vm15, %v309_v35, -inf }
 0x29e   :  { %v317_v36 = vsel %vm316_vm0, %v315_v5, -inf }
 0x29f   :  { %v318_v37 = vrot.slane %v317_v36, 4 }
 0x2a1   :  { %v319_v38 = vmax.f32 %v317_v36, %v318_v37 }
 0x2a3   :  { %v320_v39 = vrot.slane %v319_v38, 2 }
 0x2a5   :  { %v321_v40 = vmax.f32 %v319_v38, %v320_v39 }
 0x2a7   :  { %v322_v41 = vrot.slane %v321_v40, 1 }
 0x2a9   :  { %v323_v42 = vmax.f32 %v321_v40, %v322_v41 }
 0x2ab   :  { %v324_v43 = vsub.f32 %v309_v35, %v323_v42  ;;  %v335_v44 = vsub.f32 %v323_v42, %v258_v31 }
 0x2ad   :  { %v325_v45 = vmul.f32 1.442695, %v324_v43 }
 0x2af   :  { %430 = vpow2.f32 %v325_v45 }
 0x2b9   :  { %v431_v46 = vpop.eup %430 }
 0x2ba   :  { %v327_v47 = vsel %vm314_vm15, %v431_v46, 0.0 }
 0x2bb   :  { %v328_v48 = vsel %vm316_vm0, %v327_v47, 0.0 }
 0x2bc   :  { %v329_v49 = vrot.slane %v328_v48, 4 }
 0x2be   :  { %v330_v50 = vadd.f32 %v329_v49, %v328_v48 }
 0x2c0   :  { %v331_v51 = vrot.slane %v330_v50, 2 }
 0x2c2   :  { %v332_v52 = vadd.f32 %v331_v51, %v330_v50 }
 0x2c4   :  { %v333_v53 = vrot.slane %v332_v52, 1 }
 0x2c6   :  { %v334_v54 = vadd.f32 %v333_v53, %v332_v52 }
 0x2c8   :  { %432 = vlog2.f32 %v334_v54 }
 0x2d2   :  { %v433_v55 = vpop.eup %432 }
 0x2d3   :  { %v337_v56 = vmul.f32 0.6931472, %v433_v55 }
 0x2d5   :  { %v338_v57 = vadd.f32 %v337_v56, %v335_v44 }
 0x2d7   :  { %339 = vst [vmem:[#allocation7] sm:$0x1] %v338_v57 }
 0x2d8   :  { %489 = shalt.err (!%p486_p6)
}
 0x2d9   :  { %s490_s11 = scalar_lea.hbm %s633_s2, 16 }
 0x2da   :  { %p491_p7 = scmp.ne.s32.totalorder %s633_s2, %s490_s11  ;;  %p494_p8 = scmp.lt.u32.totalorder %s490_s11, %s633_s2 }
 0x2dc   :  { %p496_p9 = pnand %p494_p8, %p491_p7 }
 0x2de   :  { %499 = shalt.err (!%p496_p9)
}
 0x2df   :  { %349 = dma.vmem_to_hbm [thread:$0]  %s347_s6, 16, %s633_s2, [#allocation4]  }
 0x2e0   :  { %504 = dma.done.wait [#allocation4], 16  }
 0x2e1   :  { %505 = vsyncadd [#allocation4], 4294967280 }
 0x2e2   :  { %353 = vsyncpa [#allocation3], 1 }
 0x2e3   :  { %354 = vsyncpa [#allocation6], 1 }
 0x2e4   :  { %355 = vsyncpa [#allocation4], 1 }

// kernel: tpu_custom_call.1
= control target key start
LH: loop header
LB: loop body
LE: loop exit
PB: predicated region body
PF: predicated region fallthrough
CT: control target
= control target key end

     0   :  { %7 = vsyncpa [#allocation3], 0  ;;  %s631_s0 = inlined_call_operand.hbm [shape: s32[6,128], index: 0, kind: input, shape index: {}]   ;;  %s632_s1 = inlined_call_operand.hbm [shape: f32[16,128], index: 1, kind: input, shape index: {}]   ;;  %s633_s2 = inlined_call_operand.hbm [shape: f32[1,128], index: 2, kind: output, shape index: {}]  }
   0x1   :  { %8 = vsyncpa [#allocation6], 0 }
   0x2   :  { %9 = vsyncpa [#allocation4], 0  ;;  %s506_s9 = smov [#allocation2]   ;;  %s507_s11 = smov [#allocation5]  }
   0x3   :  { %s16_s10 = sshll.u32 %s506_s9, 4  ;;  %s25_s12 = sshll.u32 %s507_s11, 4  ;;  %s17_s10 = int_to_ptr.vmem [resolvable:$true] %s16_s10  ;;  %s528_s12 = int_to_ptr.vmem [resolvable:$true] %s25_s12 }
   0x4   :  { %s434_s15 = scalar_lea.hbm %s631_s0, 128 }
   0x5   :  { %p435_p0 = scmp.ne.s32.totalorder %s631_s0, %s434_s15  ;;  %p438_p1 = scmp.lt.u32.totalorder %s434_s15, %s631_s0 }
   0x7   :  { %p440_p2 = pnand %p438_p1, %p435_p0 }
   0x9   :  { %443 = shalt.err (!%p440_p2)
}
   0xa   :  { %s444_s20 = scalar_lea.vmem %s17_s10, 128  ;;  %p449_p4 = scmp.lt.s32.totalorder %s17_s10, %s17_s10 }
   0xb   :  { %p445_p3 = scmp.ne.s32.totalorder %s17_s10, %s444_s20  ;;  %p450_p5 = scmp.lt.s32.totalorder %s444_s20, %s444_s20 }
   0xd   :  { %p451_p6 = por %p450_p5, %p449_p4 }
   0xf   :  { %p452_p7 = pnand %p451_p6, %p445_p3 }
  0x11   :  { %455 = shalt.err (!%p452_p7)
}
  0x12   :  { %19 = dma.hbm_to_vmem [thread:$0]  %s631_s0, 128, %s17_s10, [#allocation3]  }
  0x13   :  { %s456_s25 = scalar_lea.hbm %s632_s1, 256 }
  0x14   :  { %p457_p8 = scmp.ne.s32.totalorder %s632_s1, %s456_s25  ;;  %p460_p9 = scmp.lt.u32.totalorder %s456_s25, %s632_s1 }
  0x16   :  { %p462_p10 = pnand %p460_p9, %p457_p8 }
  0x18   :  { %465 = shalt.err (!%p462_p10)
}
  0x19   :  { %s466_s30 = scalar_lea.vmem %s528_s12, 256  ;;  %p471_p12 = scmp.lt.s32.totalorder %s528_s12, %s528_s12 }
  0x1a   :  { %p467_p11 = scmp.ne.s32.totalorder %s528_s12, %s466_s30  ;;  %p472_p13 = scmp.lt.s32.totalorder %s466_s30, %s466_s30 }
  0x1c   :  { %p473_p0 = por %p472_p13, %p471_p12 }
  0x1e   :  { %p474_p1 = pnand %p473_p0, %p467_p11 }
  0x20   :  { %477 = shalt.err (!%p474_p1)
}
  0x21   :  { %s508_s0 = smov 128   ;;  %s509_s3 = smov 8  }
  0x22   :  { %31 = dma.hbm_to_vmem [thread:$0]  %s632_s1, 256, %s528_s12, [#allocation6], %s508_s0, %s508_s0, %s509_s3  }
  0x23   :  { %500 = dma.done.wait [#allocation3], 128  }
  0x24   :  { %501 = vsyncadd [#allocation3], 4294967168 }
  0x25   :  { %502 = dma.done.wait [#allocation6], 256  }
  0x26   :  { %503 = vsyncadd [#allocation6], 4294967040  ;;  %v43_v0 = vlaneseq  ;;  %v510_v1 = vmov 0.0   ;;  %v566_v5 = vld [vmem:[#allocation2] sm:$0x3f]  ;;  %v39_v6 = vld [vmem:[#allocation5] sm:$0xff] }
  0x27   :  { %402 = vmatprep.subr.bf16.mxu1 %v510_v1  ;;  %v40_v7 = vld [vmem:[#allocation5 + $0x8] sm:$0xff]  ;;  %vm73_vm2 = vcmask 130048   ;;  %vm511_vm3 = vmmov 0   ;;  %vm304_vm12 = vcmask 1040384   ;;  %vm306_vm13 = vcmask 1041408   ;;  %s512_s1 = smov [#allocation7]  }
  0x28   :  { %v560_v2 = vshrl.u32 %v43_v0, 7  ;;  %v569_v9 = vpack.c.bf16 %v40_v7, %v39_v6  ;;  %418 = vmatprep.mubr.msk.bf16.mxu1 %vm511_vm3, %v510_v1  ;;  %vm308_vm14 = vcmask 1042432   ;;  %s346_s6 = sshll.u32 %s512_s1, 4  ;;  %s347_s6 = int_to_ptr.vmem [resolvable:$true] %s346_s6 }
  0x29   :  { %s478_s7 = scalar_lea.vmem %s347_s6, 16  ;;  %s482_s8 = scalar_lea.vmem %s347_s6, 32 }
  0x2a   :  { %v48_v3 = vsub.s32 0, %v560_v2  ;;  %v564_v4 = vadd.s32 8, %v560_v2  ;;  %384 = vmatprep.subr.bf16.mxu0 %v569_v9  ;;  %v246_v45 = vsub.s32 1, %v560_v2  ;;  %v261_v46 = vsub.s32 2, %v560_v2  ;;  %p479_p2 = scmp.ne.s32.totalorder %s347_s6, %s478_s7  ;;  %p483_p3 = scmp.lt.s32.totalorder %s347_s6, %s347_s6 }
  0x2b   :  { %385 = vmatpush3.bf16.msra.mxu0 %v569_v9  ;;  %v276_v47 = vsub.s32 3, %v560_v2  ;;  %v291_v48 = vsub.s32 4, %v560_v2  ;;  %p484_p4 = scmp.lt.s32.totalorder %s482_s8, %s478_s7 }
  0x2c   :  { %v49_v8 = vrot.slane %v566_v5, %v48_v3  ;;  %v247_v49 = vrot.slane %v566_v5, %v246_v45  ;;  %v262_v50 = vrot.slane %v566_v5, %v261_v46 }
  0x2d   :  { %v277_v51 = vrot.slane %v566_v5, %v276_v47  ;;  %v292_v52 = vrot.slane %v566_v5, %v291_v48  ;;  %p485_p5 = por %p484_p4, %p483_p3 }
  0x2e   :  { %vm50_vm0 = vcmp.eq.s32.totalorder %v560_v2, %v49_v8  ;;  %vm51_vm1 = vcmp.eq.s32.totalorder %v564_v4, %v49_v8  ;;  %vm248_vm4 = vcmp.eq.s32.totalorder %v560_v2, %v247_v49  ;;  %vm263_vm5 = vcmp.eq.s32.totalorder %v560_v2, %v262_v50 }
  0x2f   :  { %v356_v10 = vsel %vm50_vm0, 1.0, %v510_v1  ;;  %v357_v11 = vsel %vm51_vm1, 1.0, %v510_v1  ;;  %vm278_vm6 = vcmp.eq.s32.totalorder %v560_v2, %v277_v51  ;;  %vm293_vm7 = vcmp.eq.s32.totalorder %v560_v2, %v292_v52  ;;  %p486_p6 = pnand %p485_p5, %p479_p2 }
  0x30   :  { %v56_v12 = vpack.c.bf16 %v357_v11, %v356_v10  ;;  %vm249_vm8 = vcmp.eq.s32.totalorder %v564_v4, %v247_v49  ;;  %vm264_vm9 = vcmp.eq.s32.totalorder %v564_v4, %v262_v50  ;;  %vm279_vm10 = vcmp.eq.s32.totalorder %v564_v4, %v277_v51 }
  0x31   :  { %vm294_vm11 = vcmp.eq.s32.totalorder %v564_v4, %v292_v52  ;;  %vm316_vm0 = vcmask 1043456  }
  0x32   :  { %57 = vxpose.xlu0.c.b16.start.end [1/1] (short) %v56_v12, 128 }
  0x98   :  { %v65_v13 = vpop.trf.xlu0 }
  0x99   :  { %386 = vmatprep.mubr.msk.bf16.mxu0 %vm73_vm2, %v65_v13 }
  0x9c   :  { %v66_v14 = vpop.trf.xlu0 }
  0x9d   :  { %387 = vmatmul.mubr.msk.bf16.vlgmr.msra.gmra.mrb[0].mxu0 %vm73_vm2, %v66_v14 }
  0xa0   :  { %v67_v15 = vpop.trf.xlu0 }
  0xa1   :  { %390 = vmatprep.mubr.msk.bf16.mxu0 %vm73_vm2, %v67_v15  ;;  %v312_v15 = vsub.s32 5, %v560_v2 }
  0xa4   :  { %v68_v16 = vpop.trf.xlu0 }
  0xa5   :  { %391 = vmatmul.mubr.msk.bf16.gmra.mrb[4].mxu0 %vm73_vm2, %v68_v16 }
  0xa8   :  { %v69_v17 = vpop.trf.xlu0 }
  0xa9   :  { %394 = vmatprep.mubr.msk.bf16.mxu0 %vm73_vm2, %v69_v17 }
  0xac   :  { %v70_v18 = vpop.trf.xlu0 }
  0xad   :  { %395 = vmatmul.mubr.msk.bf16.gmra.mrb[8].mxu0 %vm73_vm2, %v70_v18 }
  0xb0   :  { %v71_v19 = vpop.trf.xlu0 }
  0xb1   :  { %398 = vmatprep.mubr.msk.bf16.mxu0 %vm73_vm2, %v71_v19 }
  0xb4   :  { %v72_v20 = vpop.trf.xlu0 }
  0xb5   :  { %399 = vmatmul.mubr.msk.bf16.gmra.mrb[12].mxu0 %vm73_vm2, %v72_v20 }
 0x170   :  { %v388_v21 = vpop.f32.mrb[0].mxu0 }
 0x171   :  { %v132_v22 = vpop.f32.mrb[1].mxu0 }
 0x172   :  { %v389_v23 = vpop.f32.mrb[2].mxu0 }
 0x173   :  { %v196_v24 = vpack.c.bf16 %v389_v23, %v388_v21  ;;  %v135_v25 = vpop.f32.mrb[3].mxu0 }
 0x174   :  { %v195_v26 = vpack.c.bf16 %v135_v25, %v132_v22 }
 0x176   :  { %403 = vmatpush3.bf16.xpose.msra.mxu1 %v195_v26 }
 0x177   :  { %404 = vmatprep.subr.bf16.mxu1 %v510_v1 }
 0x178   :  { %v392_v27 = vpop.f32.mrb[4].mxu0 }
 0x179   :  { %v148_v28 = vpop.f32.mrb[5].mxu0 }
 0x17a   :  { %v393_v29 = vpop.f32.mrb[6].mxu0 }
 0x17b   :  { %v198_v30 = vpack.c.bf16 %v393_v29, %v392_v27  ;;  %v151_v31 = vpop.f32.mrb[7].mxu0 }
 0x17c   :  { %v197_v32 = vpack.c.bf16 %v151_v31, %v148_v28 }
 0x17e   :  { %405 = vmatpush3.bf16.xpose.msra.mxu1 %v196_v24  ;;  %v313_v24 = vrot.slane %v566_v5, %v312_v15 }
 0x17f   :  { %406 = vmatprep.subr.bf16.mxu1 %v510_v1 }
 0x180   :  { %v396_v33 = vpop.f32.mrb[8].mxu0  ;;  %vm314_vm15 = vcmp.le.s32.totalorder %v560_v2, %v313_v24 }
 0x181   :  { %v164_v34 = vpop.f32.mrb[9].mxu0 }
 0x182   :  { %v397_v35 = vpop.f32.mrb[10].mxu0 }
 0x183   :  { %v200_v36 = vpack.c.bf16 %v397_v35, %v396_v33  ;;  %v167_v37 = vpop.f32.mrb[11].mxu0 }
 0x184   :  { %v199_v38 = vpack.c.bf16 %v167_v37, %v164_v34 }
 0x186   :  { %407 = vmatpush3.bf16.xpose.msra.mxu1 %v197_v32 }
 0x187   :  { %408 = vmatprep.subr.bf16.mxu1 %v510_v1 }
 0x188   :  { %v400_v39 = vpop.f32.mrb[12].mxu0 }
 0x189   :  { %v180_v40 = vpop.f32.mrb[13].mxu0 }
 0x18a   :  { %v401_v41 = vpop.f32.mrb[14].mxu0 }
 0x18b   :  { %v202_v42 = vpack.c.bf16 %v401_v41, %v400_v39  ;;  %v183_v43 = vpop.f32.mrb[15].mxu0 }
 0x18c   :  { %v201_v44 = vpack.c.bf16 %v183_v43, %v180_v40 }
 0x18e   :  { %409 = vmatpush3.bf16.xpose.msra.mxu1 %v198_v30 }
 0x18f   :  { %410 = vmatprep.subr.bf16.mxu1 %v510_v1 }
 0x196   :  { %411 = vmatpush3.bf16.xpose.msra.mxu1 %v199_v38 }
 0x197   :  { %412 = vmatprep.subr.bf16.mxu1 %v510_v1 }
 0x19e   :  { %413 = vmatpush3.bf16.xpose.msra.mxu1 %v200_v36 }
 0x19f   :  { %414 = vmatprep.subr.bf16.mxu1 %v510_v1 }
 0x1a6   :  { %415 = vmatpush3.bf16.xpose.msra.mxu1 %v201_v44 }
 0x1a7   :  { %416 = vmatprep.subr.bf16.mxu1 %v510_v1 }
 0x1ae   :  { %417 = vmatpush3.bf16.xpose.msra.mxu1 %v202_v42 }
 0x1b5   :  { %419 = vmatmul.mubr.bf16.vlgmr.msra.gmra.mrb[0].mxu1 %v569_v9 }
 0x288   :  { %v237_v53 = vpop.f32.mrb[0].mxu1 }
 0x289   :  { %v420_v54 = vpop.f32.mrb[1].mxu1  ;;  %v250_v55 = vsel %vm248_vm4, %v237_v53, 0.0  ;;  %v265_v56 = vsel %vm263_vm5, %v237_v53, 0.0  ;;  %v280_v57 = vsel %vm278_vm6, %v237_v53, 0.0  ;;  %v295_v58 = vsel %vm293_vm7, %v237_v53, 0.0 }
 0x28a   :  { %v240_v59 = vpop.f32.mrb[2].mxu1 }
 0x28b   :  { %v251_v60 = vsel %vm249_vm8, %v240_v59, 0.0  ;;  %v266_v61 = vsel %vm264_vm9, %v240_v59, 0.0  ;;  %v281_v62 = vsel %vm279_vm10, %v240_v59, 0.0  ;;  %v296_v63 = vsel %vm294_vm11, %v240_v59, 0.0  ;;  %v421_v0 = vpop.f32.mrb[3].mxu1 }
 0x28c   :  { %v252_v1 = vadd.f32 %v251_v60, %v250_v55  ;;  %v267_v3 = vadd.f32 %v266_v61, %v265_v56  ;;  %v282_v6 = vadd.f32 %v281_v62, %v280_v57  ;;  %v297_v7 = vadd.f32 %v296_v63, %v295_v58 }
 0x28e   :  { %v253_v8 = vrot.slane %v252_v1, 4  ;;  %v268_v9 = vrot.slane %v267_v3, 4  ;;  %v283_v10 = vrot.slane %v282_v6, 4  ;;  %v298_v11 = vrot.slane %v297_v7, 4 }
 0x290   :  { %v254_v4 = vadd.f32 %v253_v8, %v252_v1  ;;  %v269_v12 = vadd.f32 %v268_v9, %v267_v3  ;;  %v284_v13 = vadd.f32 %v283_v10, %v282_v6  ;;  %v299_v14 = vadd.f32 %v298_v11, %v297_v7 }
 0x292   :  { %v255_v16 = vrot.slane %v254_v4, 2  ;;  %v270_v17 = vrot.slane %v269_v12, 2  ;;  %v285_v18 = vrot.slane %v284_v13, 2  ;;  %v300_v19 = vrot.slane %v299_v14, 2 }
 0x294   :  { %v271_v20 = vadd.f32 %v270_v17, %v269_v12  ;;  %v286_v21 = vadd.f32 %v285_v18, %v284_v13  ;;  %v301_v22 = vadd.f32 %v300_v19, %v299_v14  ;;  %v256_v23 = vadd.f32 %v255_v16, %v254_v4 }
 0x296   :  { %v272_v25 = vrot.slane %v271_v20, 1  ;;  %v287_v26 = vrot.slane %v286_v21, 1  ;;  %v302_v27 = vrot.slane %v301_v22, 1  ;;  %v257_v28 = vrot.slane %v256_v23, 1 }
 0x298   :  { %v273_v29 = vadd.f32 %v272_v25, %v271_v20  ;;  %v288_v30 = vadd.f32 %v287_v26, %v286_v21  ;;  %v258_v31 = vadd.f32 %v257_v28, %v256_v23  ;;  %v303_v32 = vadd.f32 %v302_v27, %v301_v22 }
 0x29a   :  { %v305_v33 = vsel %vm304_vm12, %v258_v31, %v273_v29 }
 0x29b   :  { %v307_v34 = vsel %vm306_vm13, %v305_v33, %v288_v30 }
 0x29c   :  { %v309_v35 = vsel %vm308_vm14, %v307_v34, %v303_v32 }
 0x29d   :  { %v315_v5 = vsel %vm314_vm15, %v309_v35, -inf }
 0x29e   :  { %v317_v36 = vsel %vm316_vm0, %v315_v5, -inf }
 0x29f   :  { %v318_v37 = vrot.slane %v317_v36, 4 }
 0x2a1   :  { %v319_v38 = vmax.f32 %v317_v36, %v318_v37 }
 0x2a3   :  { %v320_v39 = vrot.slane %v319_v38, 2 }
 0x2a5   :  { %v321_v40 = vmax.f32 %v319_v38, %v320_v39 }
 0x2a7   :  { %v322_v41 = vrot.slane %v321_v40, 1 }
 0x2a9   :  { %v323_v42 = vmax.f32 %v321_v40, %v322_v41 }
 0x2ab   :  { %v324_v43 = vsub.f32 %v309_v35, %v323_v42  ;;  %v335_v44 = vsub.f32 %v323_v42, %v258_v31 }
 0x2ad   :  { %v325_v45 = vmul.f32 1.442695, %v324_v43 }
 0x2af   :  { %430 = vpow2.f32 %v325_v45 }
 0x2b9   :  { %v431_v46 = vpop.eup %430 }
 0x2ba   :  { %v327_v47 = vsel %vm314_vm15, %v431_v46, 0.0 }
 0x2bb   :  { %v328_v48 = vsel %vm316_vm0, %v327_v47, 0.0 }
 0x2bc   :  { %v329_v49 = vrot.slane %v328_v48, 4 }
 0x2be   :  { %v330_v50 = vadd.f32 %v329_v49, %v328_v48 }
 0x2c0   :  { %v331_v51 = vrot.slane %v330_v50, 2 }
 0x2c2   :  { %v332_v52 = vadd.f32 %v331_v51, %v330_v50 }
 0x2c4   :  { %v333_v53 = vrot.slane %v332_v52, 1 }
 0x2c6   :  { %v334_v54 = vadd.f32 %v333_v53, %v332_v52 }
 0x2c8   :  { %432 = vlog2.f32 %v334_v54 }
 0x2d2   :  { %v433_v55 = vpop.eup %432 }
 0x2d3   :  { %v337_v56 = vmul.f32 0.6931472, %v433_v55 }
 0x2d5   :  { %v338_v57 = vadd.f32 %v337_v56, %v335_v44 }
 0x2d7   :  { %339 = vst [vmem:[#allocation7] sm:$0x1] %v338_v57 }
 0x2d8   :  { %489 = shalt.err (!%p486_p6)
}
 0x2d9   :  { %s490_s11 = scalar_lea.hbm %s633_s2, 16 }
 0x2da   :  { %p491_p7 = scmp.ne.s32.totalorder %s633_s2, %s490_s11  ;;  %p494_p8 = scmp.lt.u32.totalorder %s490_s11, %s633_s2 }
 0x2dc   :  { %p496_p9 = pnand %p494_p8, %p491_p7 }
 0x2de   :  { %499 = shalt.err (!%p496_p9)
}
 0x2df   :  { %349 = dma.vmem_to_hbm [thread:$0]  %s347_s6, 16, %s633_s2, [#allocation4]  }
 0x2e0   :  { %504 = dma.done.wait [#allocation4], 16  }
 0x2e1   :  { %505 = vsyncadd [#allocation4], 4294967280 }
 0x2e2   :  { %353 = vsyncpa [#allocation3], 1 }
 0x2e3   :  { %354 = vsyncpa [#allocation6], 1 }
 0x2e4   :  { %355 = vsyncpa [#allocation4], 1 }

</bundles_post_ra>
